<compile_context>
chip_gen: v5e
topology: v5e:2x2
jax: 0.10.0
libtpu: 0.0.40
codegen_flags: <defaults>
</compile_context>

<pallas_src>
import functools

import jax
import jax.numpy as jnp
from jax import lax
from jax.experimental import pallas as pl
from jax.experimental.pallas import tpu as pltpu


# ----------------------------- Pallas kernel --------------------------------
def _fused_basic_attention_kernel(x_ref, params_ref, mask_ref, o_ref, *,
                                  cin, catt, h, w):
    """Fused basicAttention forward for ONE image.

    x_ref      : (Cin, H*W)             activations, channels on sublanes
    params_ref : (2*Cin+Catt, 9*Cin+1)  [W1|b1] / [W2|b2] / [W3,0..,b3] rows
    mask_ref   : (9, H*W)               f32 {0,1} zero-pad validity per tap
    o_ref      : (Catt, H*W)
    """
    hw = h * w
    k9 = 9 * cin

    x = x_ref[...].astype(jnp.float32)           # (Cin, HW)
    p = params_ref[...]                          # (2*Cin+Catt, 9*Cin+1)
    masks = mask_ref[...]                        # (9, HW)

    w1 = p[0:cin, 0:k9]                          # (Cin, 9*Cin)
    b1 = p[0:cin, k9:k9 + 1]                     # (Cin, 1)
    w2 = p[cin:2 * cin, 0:k9]
    b2 = p[cin:2 * cin, k9:k9 + 1]
    w3 = p[2 * cin:2 * cin + catt, 0:cin]        # (Catt, Cin)
    b3 = p[2 * cin:2 * cin + catt, k9:k9 + 1]    # (Catt, 1)

    # Static per-tap lane shifts for the zero-padded 3x3 conv on one image:
    # tap t = dy*3 + dx reads source pixel (y+dy-1, x+dx-1); result[f] =
    # a[f + shift_src] is realized by an XLU roll plus an edge mask.
    tap_shifts = [(-((dy - 1) * w + (dx - 1))) % hw
                  for dy in range(3) for dx in range(3)]
    mask_rows = [masks[t:t + 1, :] for t in range(9)]     # (1, HW) each

    def conv3x3(a, w_stacked, b):
        taps = []
        for t, shift in enumerate(tap_shifts):
            rolled = a if shift == 0 else pltpu.roll(a, shift=shift, axis=1)
            if t != 4:                        # center tap never leaves the image
                rolled = rolled * mask_rows[t]
            taps.append(rolled)
        stacked = jnp.concatenate(taps, axis=0)            # (9*Cin, HW)
        # Single MXU matmul, K = 9*Cin; accumulation stays inside the MXU.
        return jnp.dot(w_stacked, stacked,
                       preferred_element_type=jnp.float32) + b

    a1 = jnp.maximum(conv3x3(x, w1, b1), 0.0)              # Conv3x3 + ReLU
    a2 = jnp.maximum(conv3x3(a1, w2, b2), 0.0)             # Conv3x3 + ReLU
    y = jnp.dot(w3, a2, preferred_element_type=jnp.float32) + b3   # Conv1x1
    # Sigmoid via tanh: one EUP op, no VALU divide (exact sigmoid identity).
    o_ref[...] = (0.5 * (jnp.tanh(0.5 * y) + 1.0)).astype(o_ref.dtype)


# ------------------------------ JAX wrapper ----------------------------------
def _pack_params(torch_params, cin, catt):
    """Pack all weights/biases into one (2*Cin+Catt, 9*Cin+1) f32 array."""
    k9 = 9 * cin

    def stack_w3x3(wkey, bkey):
        wt = torch_params[wkey]                            # (Cout, Cin, 3, 3)
        cout = wt.shape[0]
        # stacked index = (dy*3+dx)*Cin + cin  (matches kernel tap concat order)
        ws = jnp.transpose(wt, (0, 2, 3, 1)).reshape(cout, k9)
        return jnp.concatenate(
            [ws, torch_params[bkey].reshape(cout, 1)], axis=1)   # (Cout, k9+1)

    p1 = stack_w3x3("w1", "b1")                            # (Cin, 9*Cin+1)
    p2 = stack_w3x3("w2", "b2")                            # (Cin, 9*Cin+1)
    w3 = torch_params["w3"].reshape(catt, cin)
    p3 = jnp.concatenate(
        [w3, jnp.zeros((catt, k9 - cin), w3.dtype),
         torch_params["b3"].reshape(catt, 1)], axis=1)     # (Catt, 9*Cin+1)
    return jnp.concatenate([p1, p2, p3], axis=0).astype(jnp.float32)


def _boundary_masks(h, w):
    """(9, H*W) f32 {0,1}: validity of source pixel for each 3x3 tap."""
    yy, xx = jnp.meshgrid(jnp.arange(h), jnp.arange(w), indexing="ij")
    yy = yy.reshape(1, -1)
    xx = xx.reshape(1, -1)
    rows = []
    for dy in range(3):
        for dx in range(3):
            sy = yy + (dy - 1)
            sx = xx + (dx - 1)
            rows.append((sy >= 0) & (sy < h) & (sx >= 0) & (sx < w))
    return jnp.concatenate(rows, axis=0).astype(jnp.float32)


def basic_attention_forward(x_nchw, torch_params):
    """Pallas implementation of basicAttention.forward (input/output NCHW)."""
    n, cin, h, w = x_nchw.shape
    catt = torch_params["w3"].shape[0]
    hw = h * w

    # FREE reshapes only (NCHW is already channel-major per image).
    x3d = x_nchw.reshape(n, cin, hw)
    params = _pack_params(torch_params, cin, catt)
    masks = _boundary_masks(h, w)

    kernel = functools.partial(_fused_basic_attention_kernel,
                               cin=cin, catt=catt, h=h, w=w)
    out3d = pl.pallas_call(
        kernel,
        out_shape=jax.ShapeDtypeStruct((n, catt, hw), x_nchw.dtype),
        grid=(n,),
        in_specs=[
            pl.BlockSpec((None, cin, hw), lambda i: (i, 0, 0)),   # per-image x
            pl.BlockSpec(params.shape, lambda i: (0, 0)),         # resident
            pl.BlockSpec(masks.shape, lambda i: (0, 0)),          # resident
        ],
        out_specs=pl.BlockSpec((None, catt, hw), lambda i: (i, 0, 0)),
        compiler_params=pltpu.CompilerParams(
            dimension_semantics=("parallel",)),   # v7x: 2 TCs split the batch
    )(x3d, params, masks)

    return out3d.reshape(n, catt, h, w)           # free reshape back to NCHW


# ------------------------- pure-JAX reference (check) -------------------------
def _ref_conv(x_nhwc, w_torch, b):
    w_hwio = jnp.transpose(w_torch, (2, 3, 1, 0))
    pad = (w_torch.shape[2] - 1) // 2
    y = lax.conv_general_dilated(
        x_nhwc, w_hwio, window_strides=(1, 1),
        padding=((pad, pad), (pad, pad)),
        dimension_numbers=("NHWC", "HWIO", "NHWC"))
    return y + b.reshape(1, 1, 1, -1)


def basic_attention_reference(x_nchw, torch_params):
    x = jnp.transpose(x_nchw, (0, 2, 3, 1))
    y = jnp.maximum(_ref_conv(x, torch_params["w1"], torch_params["b1"]), 0.0)
    y = jnp.maximum(_ref_conv(y, torch_params["w2"], torch_params["b2"]), 0.0)
    y = jax.nn.sigmoid(_ref_conv(y, torch_params["w3"], torch_params["b3"]))
    return jnp.transpose(y, (0, 3, 1, 2))


# ---------------------------------- main --------------------------------------
if __name__ == "__main__":
    batch, in_channels, att_channels, H, W = 2, 4, 2, 16, 16

    key = jax.random.PRNGKey(0)
    kx, k1, k2, k3, kb1, kb2, kb3 = jax.random.split(key, 7)

    x = jax.random.normal(kx, (batch, in_channels, H, W), dtype=jnp.float32)

    # Synthetic parameters in PyTorch layout: (Cout, Cin, kH, kW).
    torch_params = {
        "w1": 0.2 * jax.random.normal(k1, (in_channels, in_channels, 3, 3), jnp.float32),
        "b1": 0.1 * jax.random.normal(kb1, (in_channels,), jnp.float32),
        "w2": 0.2 * jax.random.normal(k2, (in_channels, in_channels, 3, 3), jnp.float32),
        "b2": 0.1 * jax.random.normal(kb2, (in_channels,), jnp.float32),
        "w3": 0.2 * jax.random.normal(k3, (att_channels, in_channels, 1, 1), jnp.float32),
        "b3": 0.1 * jax.random.normal(kb3, (att_channels,), jnp.float32),
    }

    out = jax.jit(basic_attention_forward)(x, torch_params)
    out = jax.block_until_ready(out)

    ref = jax.block_until_ready(basic_attention_reference(x, torch_params))
    assert out.shape == (batch, att_channels, H, W)
    assert jnp.allclose(out, ref, rtol=1e-4, atol=1e-4), (
        float(jnp.max(jnp.abs(out - ref))))

    print("KERNEL_OK")
</pallas_src>

<mosaic_0001>
module attributes {stable_mosaic.version = 11 : i64} {
  func.func @_fused_basic_attention_kernel(%arg0: i32, %arg1: memref<1x4x256xf32, #tpu.memory_space<vmem>>, %arg2: memref<10x37xf32, #tpu.memory_space<vmem>>, %arg3: memref<9x256xf32, #tpu.memory_space<vmem>>, %arg4: memref<1x2x256xf32, #tpu.memory_space<vmem>>) attributes {dimension_semantics = [#tpu.dimension_semantics<parallel>], iteration_bounds = array<i64: 2>, scalar_prefetch = 0 : i64, scratch_operands = 0 : i64, tpu.core_type = #tpu.core_type<tc>, window_params = [{transform_indices = @transform_0, window_bounds = array<i64: 1, 4, 256>}, {pipeline_mode = #tpu.pipeline_mode<synchronous>, transform_indices = @transform_1, window_bounds = array<i64: 10, 37>}, {pipeline_mode = #tpu.pipeline_mode<synchronous>, transform_indices = @transform_2, window_bounds = array<i64: 9, 256>}, {transform_indices = @transform_3, window_bounds = array<i64: 1, 2, 256>}]} {
    %c0 = arith.constant 0 : index
    %c0_0 = arith.constant 0 : index
    %c0_1 = arith.constant 0 : index
    %0 = vector.load %arg1[%c0, %c0_0, %c0_1] : memref<1x4x256xf32, #tpu.memory_space<vmem>>, vector<1x4x256xf32>
    %1 = vector.shape_cast %0 : vector<1x4x256xf32> to vector<4x256xf32>
    %c0_2 = arith.constant 0 : index
    %c0_3 = arith.constant 0 : index
    %2 = vector.load %arg2[%c0_2, %c0_3] : memref<10x37xf32, #tpu.memory_space<vmem>>, vector<10x37xf32>
    %c0_4 = arith.constant 0 : index
    %c0_5 = arith.constant 0 : index
    %3 = vector.load %arg3[%c0_4, %c0_5] : memref<9x256xf32, #tpu.memory_space<vmem>>, vector<9x256xf32>
    %4 = vector.extract_strided_slice %2 {offsets = [0, 0], sizes = [4, 36], strides = [1, 1]} : vector<10x37xf32> to vector<4x36xf32>
    %5 = vector.extract_strided_slice %2 {offsets = [0, 36], sizes = [4, 1], strides = [1, 1]} : vector<10x37xf32> to vector<4x1xf32>
    %6 = vector.extract_strided_slice %2 {offsets = [4, 0], sizes = [4, 36], strides = [1, 1]} : vector<10x37xf32> to vector<4x36xf32>
    %7 = vector.extract_strided_slice %2 {offsets = [4, 36], sizes = [4, 1], strides = [1, 1]} : vector<10x37xf32> to vector<4x1xf32>
    %8 = vector.extract_strided_slice %2 {offsets = [8, 0], sizes = [2, 4], strides = [1, 1]} : vector<10x37xf32> to vector<2x4xf32>
    %9 = vector.extract_strided_slice %2 {offsets = [8, 36], sizes = [2, 1], strides = [1, 1]} : vector<10x37xf32> to vector<2x1xf32>
    %10 = vector.extract_strided_slice %3 {offsets = [0, 0], sizes = [1, 256], strides = [1, 1]} : vector<9x256xf32> to vector<1x256xf32>
    %11 = vector.extract_strided_slice %3 {offsets = [1, 0], sizes = [1, 256], strides = [1, 1]} : vector<9x256xf32> to vector<1x256xf32>
    %12 = vector.extract_strided_slice %3 {offsets = [2, 0], sizes = [1, 256], strides = [1, 1]} : vector<9x256xf32> to vector<1x256xf32>
    %13 = vector.extract_strided_slice %3 {offsets = [3, 0], sizes = [1, 256], strides = [1, 1]} : vector<9x256xf32> to vector<1x256xf32>
    %14 = vector.extract_strided_slice %3 {offsets = [5, 0], sizes = [1, 256], strides = [1, 1]} : vector<9x256xf32> to vector<1x256xf32>
    %15 = vector.extract_strided_slice %3 {offsets = [6, 0], sizes = [1, 256], strides = [1, 1]} : vector<9x256xf32> to vector<1x256xf32>
    %16 = vector.extract_strided_slice %3 {offsets = [7, 0], sizes = [1, 256], strides = [1, 1]} : vector<9x256xf32> to vector<1x256xf32>
    %17 = vector.extract_strided_slice %3 {offsets = [8, 0], sizes = [1, 256], strides = [1, 1]} : vector<9x256xf32> to vector<1x256xf32>
    %c17_i32 = arith.constant 17 : i32
    %18 = tpu.dynamic_rotate %1 by %c17_i32 dim 1 : vector<4x256xf32>, i32 -> vector<4x256xf32>
    %19 = vector.broadcast %10 : vector<1x256xf32> to vector<4x256xf32>
    %20 = arith.mulf %18, %19 : vector<4x256xf32>
    %c16_i32 = arith.constant 16 : i32
    %21 = tpu.dynamic_rotate %1 by %c16_i32 dim 1 : vector<4x256xf32>, i32 -> vector<4x256xf32>
    %22 = vector.broadcast %11 : vector<1x256xf32> to vector<4x256xf32>
    %23 = arith.mulf %21, %22 : vector<4x256xf32>
    %c15_i32 = arith.constant 15 : i32
    %24 = tpu.dynamic_rotate %1 by %c15_i32 dim 1 : vector<4x256xf32>, i32 -> vector<4x256xf32>
    %25 = vector.broadcast %12 : vector<1x256xf32> to vector<4x256xf32>
    %26 = arith.mulf %24, %25 : vector<4x256xf32>
    %c1_i32 = arith.constant 1 : i32
    %27 = tpu.dynamic_rotate %1 by %c1_i32 dim 1 : vector<4x256xf32>, i32 -> vector<4x256xf32>
    %28 = vector.broadcast %13 : vector<1x256xf32> to vector<4x256xf32>
    %29 = arith.mulf %27, %28 : vector<4x256xf32>
    %c255_i32 = arith.constant 255 : i32
    %30 = tpu.dynamic_rotate %1 by %c255_i32 dim 1 : vector<4x256xf32>, i32 -> vector<4x256xf32>
    %31 = vector.broadcast %14 : vector<1x256xf32> to vector<4x256xf32>
    %32 = arith.mulf %30, %31 : vector<4x256xf32>
    %c241_i32 = arith.constant 241 : i32
    %33 = tpu.dynamic_rotate %1 by %c241_i32 dim 1 : vector<4x256xf32>, i32 -> vector<4x256xf32>
    %34 = vector.broadcast %15 : vector<1x256xf32> to vector<4x256xf32>
    %35 = arith.mulf %33, %34 : vector<4x256xf32>
    %c240_i32 = arith.constant 240 : i32
    %36 = tpu.dynamic_rotate %1 by %c240_i32 dim 1 : vector<4x256xf32>, i32 -> vector<4x256xf32>
    %37 = vector.broadcast %16 : vector<1x256xf32> to vector<4x256xf32>
    %38 = arith.mulf %36, %37 : vector<4x256xf32>
    %c239_i32 = arith.constant 239 : i32
    %39 = tpu.dynamic_rotate %1 by %c239_i32 dim 1 : vector<4x256xf32>, i32 -> vector<4x256xf32>
    %40 = vector.broadcast %17 : vector<1x256xf32> to vector<4x256xf32>
    %41 = arith.mulf %39, %40 : vector<4x256xf32>
    %42 = tpu.concatenate %20, %23, %26, %29, %1, %32, %35, %38, %41 in 0 : vector<4x256xf32>, vector<4x256xf32>, vector<4x256xf32>, vector<4x256xf32>, vector<4x256xf32>, vector<4x256xf32>, vector<4x256xf32>, vector<4x256xf32>, vector<4x256xf32> -> vector<36x256xf32>
    %cst = arith.constant dense<0.000000e+00> : vector<4x256xf32>
    %43 = tpu.matmul %4, %42, %cst {dimension_numbers = #tpu.dot_dimension_numbers<[1], [0], [0], [1], [0, 0, 1, 1], [], []>} : vector<4x36xf32>, vector<36x256xf32>, vector<4x256xf32> -> vector<4x256xf32>
    %44 = vector.broadcast %5 : vector<4x1xf32> to vector<4x256xf32>
    %45 = arith.addf %43, %44 : vector<4x256xf32>
    %cst_6 = arith.constant 0.000000e+00 : f32
    %46 = vector.broadcast %cst_6 : f32 to vector<4x256xf32>
    %47 = arith.maximumf %45, %46 : vector<4x256xf32>
    %c17_i32_7 = arith.constant 17 : i32
    %48 = tpu.dynamic_rotate %47 by %c17_i32_7 dim 1 : vector<4x256xf32>, i32 -> vector<4x256xf32>
    %49 = vector.broadcast %10 : vector<1x256xf32> to vector<4x256xf32>
    %50 = arith.mulf %48, %49 : vector<4x256xf32>
    %c16_i32_8 = arith.constant 16 : i32
    %51 = tpu.dynamic_rotate %47 by %c16_i32_8 dim 1 : vector<4x256xf32>, i32 -> vector<4x256xf32>
    %52 = vector.broadcast %11 : vector<1x256xf32> to vector<4x256xf32>
    %53 = arith.mulf %51, %52 : vector<4x256xf32>
    %c15_i32_9 = arith.constant 15 : i32
    %54 = tpu.dynamic_rotate %47 by %c15_i32_9 dim 1 : vector<4x256xf32>, i32 -> vector<4x256xf32>
    %55 = vector.broadcast %12 : vector<1x256xf32> to vector<4x256xf32>
    %56 = arith.mulf %54, %55 : vector<4x256xf32>
    %c1_i32_10 = arith.constant 1 : i32
    %57 = tpu.dynamic_rotate %47 by %c1_i32_10 dim 1 : vector<4x256xf32>, i32 -> vector<4x256xf32>
    %58 = vector.broadcast %13 : vector<1x256xf32> to vector<4x256xf32>
    %59 = arith.mulf %57, %58 : vector<4x256xf32>
    %c255_i32_11 = arith.constant 255 : i32
    %60 = tpu.dynamic_rotate %47 by %c255_i32_11 dim 1 : vector<4x256xf32>, i32 -> vector<4x256xf32>
    %61 = vector.broadcast %14 : vector<1x256xf32> to vector<4x256xf32>
    %62 = arith.mulf %60, %61 : vector<4x256xf32>
    %c241_i32_12 = arith.constant 241 : i32
    %63 = tpu.dynamic_rotate %47 by %c241_i32_12 dim 1 : vector<4x256xf32>, i32 -> vector<4x256xf32>
    %64 = vector.broadcast %15 : vector<1x256xf32> to vector<4x256xf32>
    %65 = arith.mulf %63, %64 : vector<4x256xf32>
    %c240_i32_13 = arith.constant 240 : i32
    %66 = tpu.dynamic_rotate %47 by %c240_i32_13 dim 1 : vector<4x256xf32>, i32 -> vector<4x256xf32>
    %67 = vector.broadcast %16 : vector<1x256xf32> to vector<4x256xf32>
    %68 = arith.mulf %66, %67 : vector<4x256xf32>
    %c239_i32_14 = arith.constant 239 : i32
    %69 = tpu.dynamic_rotate %47 by %c239_i32_14 dim 1 : vector<4x256xf32>, i32 -> vector<4x256xf32>
    %70 = vector.broadcast %17 : vector<1x256xf32> to vector<4x256xf32>
    %71 = arith.mulf %69, %70 : vector<4x256xf32>
    %72 = tpu.concatenate %50, %53, %56, %59, %47, %62, %65, %68, %71 in 0 : vector<4x256xf32>, vector<4x256xf32>, vector<4x256xf32>, vector<4x256xf32>, vector<4x256xf32>, vector<4x256xf32>, vector<4x256xf32>, vector<4x256xf32>, vector<4x256xf32> -> vector<36x256xf32>
    %cst_15 = arith.constant dense<0.000000e+00> : vector<4x256xf32>
    %73 = tpu.matmul %6, %72, %cst_15 {dimension_numbers = #tpu.dot_dimension_numbers<[1], [0], [0], [1], [0, 0, 1, 1], [], []>} : vector<4x36xf32>, vector<36x256xf32>, vector<4x256xf32> -> vector<4x256xf32>
    %74 = vector.broadcast %7 : vector<4x1xf32> to vector<4x256xf32>
    %75 = arith.addf %73, %74 : vector<4x256xf32>
    %cst_16 = arith.constant 0.000000e+00 : f32
    %76 = vector.broadcast %cst_16 : f32 to vector<4x256xf32>
    %77 = arith.maximumf %75, %76 : vector<4x256xf32>
    %cst_17 = arith.constant dense<0.000000e+00> : vector<2x256xf32>
    %78 = tpu.matmul %8, %77, %cst_17 {dimension_numbers = #tpu.dot_dimension_numbers<[1], [0], [0], [1], [0, 0, 1, 1], [], []>} : vector<2x4xf32>, vector<4x256xf32>, vector<2x256xf32> -> vector<2x256xf32>
    %79 = vector.broadcast %9 : vector<2x1xf32> to vector<2x256xf32>
    %80 = arith.addf %78, %79 : vector<2x256xf32>
    %cst_18 = arith.constant 5.000000e-01 : f32
    %81 = vector.broadcast %cst_18 : f32 to vector<2x256xf32>
    %82 = arith.mulf %81, %80 : vector<2x256xf32>
    %83 = math.tanh %82 : vector<2x256xf32>
    %cst_19 = arith.constant 1.000000e+00 : f32
    %84 = vector.broadcast %cst_19 : f32 to vector<2x256xf32>
    %85 = arith.addf %83, %84 : vector<2x256xf32>
    %cst_20 = arith.constant 5.000000e-01 : f32
    %86 = vector.broadcast %cst_20 : f32 to vector<2x256xf32>
    %87 = arith.mulf %86, %85 : vector<2x256xf32>
    %c0_21 = arith.constant 0 : index
    %c0_22 = arith.constant 0 : index
    %c0_23 = arith.constant 0 : index
    %88 = vector.load %arg4[%c0_21, %c0_22, %c0_23] : memref<1x2x256xf32, #tpu.memory_space<vmem>>, vector<1x2x256xf32>
    %89 = vector.shape_cast %88 : vector<1x2x256xf32> to vector<2x256xf32>
    %90 = vector.shape_cast %87 : vector<2x256xf32> to vector<1x2x256xf32>
    tpu.vector_store %arg4[%c0_21, %c0_22, %c0_23], %90 {strides = array<i32>} : memref<1x2x256xf32, #tpu.memory_space<vmem>>, vector<1x2x256xf32>,
    return
  }
  func.func @transform_0(%arg0: i32) -> (i32, i32, i32) {
    %c0_i32 = arith.constant 0 : i32
    %c0_i32_0 = arith.constant 0 : i32
    %c0_i32_1 = arith.constant 0 : i32
    return %arg0, %c0_i32, %c0_i32_0 : i32, i32, i32
  }
  func.func @transform_1(%arg0: i32) -> (i32, i32) {
    %c0_i32 = arith.constant 0 : i32
    %c0_i32_0 = arith.constant 0 : i32
    %c0_i32_1 = arith.constant 0 : i32
    return %c0_i32, %c0_i32_0 : i32, i32
  }
  func.func @transform_2(%arg0: i32) -> (i32, i32) {
    %c0_i32 = arith.constant 0 : i32
    %c0_i32_0 = arith.constant 0 : i32
    %c0_i32_1 = arith.constant 0 : i32
    return %c0_i32, %c0_i32_0 : i32, i32
  }
  func.func @transform_3(%arg0: i32) -> (i32, i32, i32) {
    %c0_i32 = arith.constant 0 : i32
    %c0_i32_0 = arith.constant 0 : i32
    %c0_i32_1 = arith.constant 0 : i32
    return %arg0, %c0_i32, %c0_i32_0 : i32, i32, i32
  }
}

</mosaic_0001>

<bundles_post_ra>
// kernel: basic_attention_forward.1
= control target key start
LH: loop header
LB: loop body
LE: loop exit
PB: predicated region body
PF: predicated region fallthrough
CT: control target
= control target key end

     0   :  { %s763_s12 = smov 0   ;;  %s1035_s0 = inlined_call_operand.vmem [shape: f32[2,4,256], index: 0, kind: input, shape index: {}]   ;;  %s1036_s1 = inlined_call_operand.vmem [shape: f32[10,37], index: 1, kind: input, shape index: {}]   ;;  %s1037_s2 = inlined_call_operand.vmem [shape: f32[9,256], index: 2, kind: input, shape index: {}]   ;;  %s1038_s3 = inlined_call_operand.vmem [shape: f32[2,2,256], index: 3, kind: output, shape index: {}]  }
   0x1 LB: > { %s676_s13 = sadd.s32 4294967295, %s732_s12   ;;  %p680_p0 = scmp.ge.s32.totalorder %s732_s12, 1  ;;  %s732_s12 = sphi %s763_s12, %s13_s12  }
   0x2   : > { %p137_p1 = scmp.lt.s32.totalorder %s732_s12, 3 }
   0x4   : > { %p138_p2 = pnand %p680_p0, %p137_p1 }
   0x5   : > { %p161_p3 = scmp.lt.s32.totalorder (!%p138_p2), %s676_s13, 1  ;;  %s734_s18 = smov (!%p138_p2), 16  }
   0x6   : > { %141 = sbr.rel (%p138_p2) target bundleno = 783 (0x30f), region = 32  ;;  %s735_s19 = smov (!%p138_p2), 15  }
   0x7   : > { %s736_s20 = smov (!%p138_p2), 1   ;;  %s737_s21 = smov (!%p138_p2), 127  }
   0x8   : > { %s738_s22 = smov (!%p138_p2), 113   ;;  %s739_s23 = smov (!%p138_p2), 112  }
   0x9   : > { %s740_s24 = smov (!%p138_p2), 17   ;;  %s741_s25 = smov (!%p138_p2), 111  }
   0xb   : > { %s1040_s13 = smov (!%p161_p3, %s676_s13), 1  ;;  %v188_v25 = vlaneseq  ;;  %v800_v27 = vld [vmem:[%s1036_s1] sm:$0xff]  ;;  %v742_v28 = vmov 36   ;;  %v815_v32 = vld [vmem:[%s1037_s2 + $0x8] sm:$0xff]  ;;  %v845_v50 = vld [vmem:[%s1037_s2 + $0x10] ss:$0 sm:$0xff] }
   0xc   : > { %s699_s14 = sshll.u32 %s1040_s13, 3  ;;  %718 = vset.pattern.permute.xlu1 %v742_v28  ;;  %719 = vset.pattern.permute.xlu0 %v742_v28  ;;  %v809_v30 = vld [vmem:[%s1037_s2] sm:$0xff]  ;;  %v290_v38 = vperm.slane %v815_v32, 7  ;;  %v258_v42 = vperm.slane %v815_v32, 5  ;;  %v210_v43 = vperm.slane %v815_v32, 1  ;;  %v242_v49 = vperm.slane %v815_v32, 3 }
   0xd   : > { %s165_s17 = scalar_lea.vmem %s1035_s0, %s699_s14  ;;  %v803_v29 = vand.u32 127, %v188_v25  ;;  %v257_v33 = vperm.slane %v809_v30, 5  ;;  %v289_v37 = vperm.slane %v809_v30, 7  ;;  %v209_v41 = vperm.slane %v809_v30, 1  ;;  %v850_v51 = vld [vmem:[%s1037_s2 + $0x18] ss:$0 sm:$0xff] }
   0xe   : > { %v171_v0 = vld [vmem:[%s165_s17] sm:$0xff]  ;;  %v241_v44 = vperm.slane %v809_v30, 3  ;;  %v273_v52 = vperm.slane %v809_v30, 6  ;;  %v274_v53 = vperm.slane %v815_v32, 6  ;;  %vm338_vm6 = vcmask 1043456   ;;  %s700_s11 = sshll.u32 %s1040_s13, 2 }
   0xf   : > { %179 = vst [vmem:[#allocation1] ss:$2 sm:$0xff] %v171_v0  ;;  %vm254_vm0 = vcmp.lt.s32.totalorder %v803_v29, 127  ;;  %vm286_vm1 = vcmp.lt.s32.totalorder %v803_v29, 112  ;;  %vm238_vm2 = vcmp.lt.s32.totalorder %v803_v29, 1  ;;  %vm270_vm3 = vcmp.lt.s32.totalorder %v803_v29, 113  ;;  %s170_s16 = scalar_lea.vmem %s1038_s3, %s700_s11 }
  0x10   : > { %vm302_vm4 = vcmp.lt.s32.totalorder %v803_v29, 111  ;;  %vm206_vm5 = vcmp.lt.s32.totalorder %v803_v29, 16  ;;  %vm190_vm7 = vcmp.lt.s32.totalorder %v803_v29, 17  ;;  %vm222_vm8 = vcmp.lt.s32.totalorder %v803_v29, 15 }
  0x11   : > { %vm352_vm9 = vcmask 293888   ;;  %vm557_vm10 = vcmask 31744   ;;  %vm617_vm11 = vcmask 1041408  }
  0x16   : > { %v180_v1 = vld.sshfl [vmem:[#allocation1] sm:$0xff pattern:$0x75316420]  ;;  %v181_v2 = vld.sshfl [vmem:[#allocation1 + $0x8] sm:$0xff pattern:$0x75316420] }
  0x17   : > { %197 = vst [vmem:[#allocation1] ss:$2 sm:$0xff] %v171_v0 }
  0x1e   : > { %v198_v3 = vld.sshfl [vmem:[#allocation1] sm:$0xff pattern:$0x75316420]  ;;  %v199_v4 = vld.sshfl [vmem:[#allocation1 + $0x8] sm:$0xff pattern:$0x75316420] }
  0x1f   : > { %213 = vst [vmem:[#allocation1] ss:$2 sm:$0xff] %v171_v0  ;;  %202 = vrot.lane.b32.xlu1 %v198_v3, %s734_s18  ;;  %204 = vrot.lane.b32.xlu2 %v199_v4, %s734_s18 }
  0x26   : > { %v214_v5 = vld.sshfl [vmem:[#allocation1] sm:$0xff pattern:$0x75316420]  ;;  %v215_v6 = vld.sshfl [vmem:[#allocation1 + $0x8] sm:$0xff pattern:$0x75316420] }
  0x27   : > { %218 = vrot.lane.b32.xlu0 %v214_v5, %s735_s19  ;;  %229 = vst [vmem:[#allocation1] ss:$2 sm:$0xff] %v171_v0 }
  0x2e   : > { %v231_v7 = vld.sshfl [vmem:[#allocation1 + $0x8] sm:$0xff pattern:$0x75316420]  ;;  %v230_v8 = vld.sshfl [vmem:[#allocation1] sm:$0xff pattern:$0x75316420] }
  0x2f   : > { %236 = vrot.lane.b32.xlu0 %v231_v7, %s736_s20  ;;  %245 = vst [vmem:[#allocation1] ss:$2 sm:$0xff] %v171_v0  ;;  %234 = vrot.lane.b32.xlu2 %v230_v8, %s736_s20 }
  0x36   : > { %v246_v9 = vld.sshfl [vmem:[#allocation1] sm:$0xff pattern:$0x75316420]  ;;  %v247_v10 = vld.sshfl [vmem:[#allocation1 + $0x8] sm:$0xff pattern:$0x75316420] }
  0x37   : > { %261 = vst [vmem:[#allocation1] ss:$2 sm:$0xff] %v171_v0  ;;  %250 = vrot.lane.b32.xlu2 %v246_v9, %s737_s21 }
  0x3e   : > { %v262_v11 = vld.sshfl [vmem:[#allocation1] sm:$0xff pattern:$0x75316420]  ;;  %v263_v12 = vld.sshfl [vmem:[#allocation1 + $0x8] sm:$0xff pattern:$0x75316420] }
  0x3f   : > { %266 = vrot.lane.b32.xlu0 %v262_v11, %s738_s22  ;;  %268 = vrot.lane.b32.xlu1 %v263_v12, %s738_s22  ;;  %277 = vst [vmem:[#allocation1] ss:$2 sm:$0xff] %v171_v0 }
  0x40   : > { %252 = vrot.lane.b32.xlu2 %v247_v10, %s737_s21 }
  0x46   : > { %v278_v13 = vld.sshfl [vmem:[#allocation1] sm:$0xff pattern:$0x75316420]  ;;  %v279_v14 = vld.sshfl [vmem:[#allocation1 + $0x8] sm:$0xff pattern:$0x75316420] }
  0x47   : > { %282 = vrot.lane.b32.xlu0 %v278_v13, %s739_s23  ;;  %293 = vst [vmem:[#allocation1] ss:$2 sm:$0xff] %v171_v0 }
  0x48   : > { %184 = vrot.lane.b32.xlu2 %v180_v1, %s740_s24 }
  0x4e   : > { %v294_v15 = vld.sshfl [vmem:[#allocation1] sm:$0xff pattern:$0x75316420]  ;;  %v295_v16 = vld.sshfl [vmem:[#allocation1 + $0x8] sm:$0xff pattern:$0x75316420] }
  0x4f   : > { %284 = vrot.lane.b32.xlu0 %v279_v14, %s739_s23  ;;  %298 = vrot.lane.b32.xlu1 %v294_v15, %s741_s25  ;;  %321 = vst [vmem:[#allocation1] ss:$2 sm:$0xff] %v171_v0  ;;  %v193_v14 = vperm.slane %v809_v30, 0 }
  0x56   : > { %v322_v11 = vld.sshfl [vmem:[#allocation1] sm:$0xff pattern:$0x75316420]  ;;  %v323_v12 = vld.sshfl [vmem:[#allocation1 + $0x8] sm:$0xff pattern:$0x75316420] }
  0x57   : > { %186 = vrot.lane.b32.xlu0 %v181_v2, %s740_s24  ;;  %300 = vrot.lane.b32.xlu1 %v295_v16, %s741_s25 }
  0x5f   : > { %220 = vrot.lane.b32.xlu1 %v215_v6, %s735_s19 }
  0x67   : > { %349 = vperm.xlu1 %718, %v800_v27  }
  0x79   : > { %v795_v18 = vpop.permute.xlu2 %204 }
  0x89   : > { %v235_v20 = vpop.permute.xlu2 %234 }
  0x91   : > { %v203_v21 = vpop.permute.xlu1 %202  ;;  %v251_v23 = vpop.permute.xlu2 %250 }
  0x92   : > { %v207_v6 = vsel %vm206_vm5, %v203_v21, %v795_v18  ;;  %v208_v7 = vsel %vm206_vm5, %v795_v18, %v203_v21  ;;  %v194_v18 = vperm.slane %v815_v32, 0 }
  0x93   : > { %v211_v25 = vmul.f32 %v209_v41, %v208_v7 }
  0x99   : > { %v793_v17 = vpop.permute.xlu0 %218 }
  0x9a   : > { %v253_v31 = vpop.permute.xlu2 %252 }
  0x9b   : > { %v255_v36 = vsel %vm254_vm0, %v251_v23, %v253_v31  ;;  %v256_v45 = vsel %vm254_vm0, %v253_v31, %v251_v23 }
  0x9c   : > { %v259_v46 = vmul.f32 %v257_v33, %v255_v36  ;;  %v260_v54 = vmul.f32 %v258_v42, %v256_v45 }
  0x9e   : > { %v328_v58 = vrot.slane %v259_v46, 4  ;;  %v329_v5 = vrot.slane %v260_v54, 4 }
  0xa0   : > { %v343_v23 = vsel %vm338_vm6, %v322_v11, %v328_v58 }
  0xa1   : > { %v237_v19 = vpop.permute.xlu0 %236 }
  0xa2   : > { %v240_v55 = vsel %vm238_vm2, %v237_v19, %v235_v20  ;;  %v239_v0 = vsel %vm238_vm2, %v235_v20, %v237_v19  ;;  %v185_v9 = vpop.permute.xlu2 %184  ;;  %v225_v19 = vperm.slane %v809_v30, 2  ;;  %v226_v20 = vperm.slane %v815_v32, 2 }
  0xa3   : > { %v243_v8 = vmul.f32 %v241_v44, %v240_v55  ;;  %v244_v13 = vmul.f32 %v242_v49, %v239_v0 }
  0xa5   : > { %v317_v31 = vrot.slane %v243_v8, 4 }
  0xb1   : > { %v267_v22 = vpop.permute.xlu0 %266  ;;  %v269_v24 = vpop.permute.xlu1 %268 }
  0xb2   : > { %v271_v56 = vsel %vm270_vm3, %v267_v22, %v269_v24  ;;  %v272_v57 = vsel %vm270_vm3, %v269_v24, %v267_v22  ;;  %v344_v24 = vsel %vm338_vm6, %v323_v12, %v329_v5 }
  0xb3   : > { %v275_v3 = vmul.f32 %v273_v52, %v271_v56  ;;  %v276_v4 = vmul.f32 %v274_v53, %v272_v57 }
  0xb9   : > { %v283_v26 = vpop.permute.xlu0 %282 }
  0xc1   : > { %v285_v34 = vpop.permute.xlu0 %284  ;;  %v299_v35 = vpop.permute.xlu1 %298 }
  0xc2   : > { %v287_v39 = vsel %vm286_vm1, %v283_v26, %v285_v34  ;;  %v288_v40 = vsel %vm286_vm1, %v285_v34, %v283_v26  ;;  %v212_v26 = vmul.f32 %v210_v43, %v207_v6  ;;  %v318_v34 = vrot.slane %v244_v13, 4 }
  0xc3   : > { %v291_v47 = vmul.f32 %v289_v37, %v287_v39  ;;  %v292_v48 = vmul.f32 %v290_v38, %v288_v40 }
  0xc5   : > { %v334_v60 = vrot.slane %v291_v47, 4  ;;  %v335_v61 = vrot.slane %v292_v48, 4  ;;  %v311_v47 = vrot.slane %v211_v25, 4  ;;  %v312_v48 = vrot.slane %v212_v26, 4 }
  0xc7   : > { %v345_v15 = vsel %vm338_vm6, %v275_v3, %v334_v60  ;;  %v346_v16 = vsel %vm338_vm6, %v276_v4, %v335_v61 }
  0xc9   : > { %v301_v59 = vpop.permute.xlu1 %300  ;;  %v187_v10 = vpop.permute.xlu0 %186 }
  0xca   : > { %v303_v62 = vsel %vm302_vm4, %v299_v35, %v301_v59  ;;  %v304_v63 = vsel %vm302_vm4, %v301_v59, %v299_v35  ;;  %v191_v21 = vsel %vm190_vm7, %v185_v9, %v187_v10  ;;  %v192_v22 = vsel %vm190_vm7, %v187_v10, %v185_v9 }
  0xcb   : > { %v307_v1 = vmul.f32 %v845_v50, %v303_v62  ;;  %v308_v2 = vmul.f32 %v850_v51, %v304_v63  ;;  %v195_v39 = vmul.f32 %v193_v14, %v192_v22  ;;  %v196_v40 = vmul.f32 %v194_v18, %v191_v21 }
  0xcd   : > { %685 = vmatpush.msk.msra.mxu0 %vm338_vm6, %v307_v1  ;;  %687 = vmatpush.msk.msra.mxu1 %vm338_vm6, %v308_v2  ;;  %v340_v56 = vsel %vm338_vm6, %v196_v40, %v312_v48 }
  0xcf   : > { %373 = vmatpush.msra.mxu0 %v345_v15  ;;  %393 = vmatpush.msra.mxu1 %v346_v16 }
  0xd1   : > { %v221_v28 = vpop.permute.xlu1 %220  ;;  %374 = vmatpush.msra.mxu0 %v343_v23  ;;  %394 = vmatpush.msra.mxu1 %v344_v24 }
  0xd2   : > { %v223_v35 = vsel %vm222_vm8, %v793_v17, %v221_v28  ;;  %v224_v36 = vsel %vm222_vm8, %v221_v28, %v793_v17  ;;  %v339_v17 = vsel %vm338_vm6, %v195_v39, %v311_v47 }
  0xd3   : > { %v227_v45 = vmul.f32 %v225_v19, %v224_v36  ;;  %v228_v46 = vmul.f32 %v226_v20, %v223_v35 }
  0xd5   : > { %v341_v54 = vsel %vm338_vm6, %v227_v45, %v317_v31  ;;  %v342_v55 = vsel %vm338_vm6, %v228_v46, %v318_v34 }
  0xd6   : > { %375 = vmatpush.msra.mxu0 %v341_v54  ;;  %395 = vmatpush.msra.mxu1 %v342_v55 }
  0xd8   : > { %376 = vmatpush.msra.mxu0 %v339_v17  ;;  %396 = vmatpush.msra.mxu1 %v340_v56 }
  0xd9   : > { %686 = vmatmul.msk.f32.vlgmr.msra.gmra.mxu0 %vm352_vm9, %v800_v27  ;;  %688 = vmatmul.msk.f32.vlgmr.msra.gmra.mxu1 %vm352_vm9, %v800_v27  ;;  %v927_v57 = vpop.permute.xlu1 %349 }
  0xda   : > { %v500_v30 = vrot.slane %v927_v57, 4 }
 0x156   : > { %v378_v58 = vpop.f32.mrf.mxu0  ;;  %v398_v59 = vpop.f32.mrf.mxu1 }
 0x157   : > { %v379_v60 = vadd.f32 %v378_v58, %v927_v57  ;;  %v399_v61 = vadd.f32 %v398_v59, %v927_v57 }
 0x159   : > { %v401_v62 = vmax.f32 %v379_v60, 0.0  ;;  %v402_v63 = vmax.f32 %v399_v61, 0.0 }
 0x15b   : > { %453 = vrot.lane.b32.xlu0 %v402_v63, %s739_s23  ;;  %459 = vrot.lane.b32.xlu1 %v401_v62, %s741_s25 }
 0x15c   : > { %451 = vrot.lane.b32.xlu2 %v401_v62, %s739_s23 }
 0x163   : > { %435 = vrot.lane.b32.xlu0 %v401_v62, %s737_s21  ;;  %437 = vrot.lane.b32.xlu1 %v402_v63, %s737_s21 }
 0x164   : > { %461 = vrot.lane.b32.xlu2 %v402_v63, %s741_s25 }
 0x16b   : > { %445 = vrot.lane.b32.xlu0 %v402_v63, %s738_s22  ;;  %427 = vrot.lane.b32.xlu1 %v401_v62, %s736_s20 }
 0x16c   : > { %443 = vrot.lane.b32.xlu2 %v401_v62, %s738_s22 }
 0x173   : > { %411 = vrot.lane.b32.xlu0 %v401_v62, %s734_s18  ;;  %413 = vrot.lane.b32.xlu1 %v402_v63, %s734_s18 }
 0x174   : > { %429 = vrot.lane.b32.xlu2 %v402_v63, %s736_s20 }
 0x17b   : > { %421 = vrot.lane.b32.xlu0 %v402_v63, %s735_s19  ;;  %403 = vrot.lane.b32.xlu1 %v401_v62, %s740_s24 }
 0x17c   : > { %419 = vrot.lane.b32.xlu2 %v401_v62, %s735_s19 }
 0x184   : > { %405 = vrot.lane.b32.xlu2 %v402_v63, %s740_s24 }
 0x1b6   : > { %v452_v0 = vpop.permute.xlu2 %451 }
 0x1be   : > { %v462_v1 = vpop.permute.xlu2 %461 }
 0x1c6   : > { %v444_v4 = vpop.permute.xlu2 %443 }
 0x1cd   : > { %v454_v2 = vpop.permute.xlu0 %453  ;;  %v460_v3 = vpop.permute.xlu1 %459 }
 0x1ce   : > { %v463_v5 = vsel %vm302_vm4, %v460_v3, %v462_v1  ;;  %v464_v6 = vsel %vm302_vm4, %v462_v1, %v460_v3  ;;  %v455_v11 = vsel %vm286_vm1, %v452_v0, %v454_v2  ;;  %v456_v12 = vsel %vm286_vm1, %v454_v2, %v452_v0  ;;  %v430_v13 = vpop.permute.xlu2 %429 }
 0x1cf   : > { %v465_v7 = vmul.f32 %v845_v50, %v463_v5  ;;  %v466_v8 = vmul.f32 %v850_v51, %v464_v6  ;;  %v457_v51 = vmul.f32 %v455_v11, %v289_v37  ;;  %v458_v16 = vmul.f32 %v456_v12, %v290_v38 }
 0x1d0   : > { %v499_v3 = vrot.slane %v800_v27, 4  ;;  %v173_v27 = vld [vmem:[%s1036_s1 + $0x8] sm:$0x3] }
 0x1d1   : > { %689 = vmatpush.msk.msra.mxu2 %vm338_vm6, %v465_v7  ;;  %691 = vmatpush.msk.msra.mxu3 %vm338_vm6, %v466_v8  ;;  %v487_v25 = vrot.slane %v457_v51, 4  ;;  %v488_v26 = vrot.slane %v458_v16, 4 }
 0x1d2   : > { %554 = vperm.xlu0 %719, %v173_v27  }
 0x1d5   : > { %v436_v9 = vpop.permute.xlu0 %435  ;;  %v438_v10 = vpop.permute.xlu1 %437 }
 0x1d6   : > { %v439_v15 = vsel %vm254_vm0, %v436_v9, %v438_v10  ;;  %v440_v50 = vsel %vm254_vm0, %v438_v10, %v436_v9  ;;  %v420_v36 = vpop.permute.xlu2 %419 }
 0x1d7   : > { %v441_v21 = vmul.f32 %v439_v15, %v257_v33  ;;  %v442_v22 = vmul.f32 %v440_v50, %v258_v42 }
 0x1d9   : > { %v481_v37 = vrot.slane %v441_v21, 4  ;;  %v482_v34 = vrot.slane %v442_v22, 4 }
 0x1db   : > { %v495_v39 = vsel %vm338_vm6, %v401_v62, %v481_v37  ;;  %v496_v40 = vsel %vm338_vm6, %v402_v63, %v482_v34 }
 0x1dd   : > { %v446_v23 = vpop.permute.xlu0 %445  ;;  %v428_v24 = vpop.permute.xlu1 %427 }
 0x1de   : > { %v447_v28 = vsel %vm270_vm3, %v444_v4, %v446_v23  ;;  %v448_v31 = vsel %vm270_vm3, %v446_v23, %v444_v4  ;;  %v406_v17 = vpop.permute.xlu2 %405 }
 0x1df   : > { %v449_v38 = vmul.f32 %v447_v28, %v273_v52  ;;  %v450_v33 = vmul.f32 %v448_v31, %v274_v53  ;;  %v431_v52 = vsel %vm238_vm2, %v428_v24, %v430_v13  ;;  %v432_v53 = vsel %vm238_vm2, %v430_v13, %v428_v24 }
 0x1e0   : > { %v433_v47 = vmul.f32 %v432_v53, %v241_v44  ;;  %v434_v48 = vmul.f32 %v431_v52, %v242_v49 }
 0x1e1   : > { %v497_v42 = vsel %vm338_vm6, %v449_v38, %v487_v25  ;;  %v498_v35 = vsel %vm338_vm6, %v450_v33, %v488_v26 }
 0x1e2   : > { %522 = vmatpush.msra.mxu2 %v497_v42  ;;  %542 = vmatpush.msra.mxu3 %v498_v35  ;;  %v475_v56 = vrot.slane %v433_v47, 4  ;;  %v476_v58 = vrot.slane %v434_v48, 4 }
 0x1e4   : > { %523 = vmatpush.msra.mxu2 %v495_v39  ;;  %543 = vmatpush.msra.mxu3 %v496_v40 }
 0x1e5   : > { %v412_v45 = vpop.permute.xlu0 %411  ;;  %v414_v46 = vpop.permute.xlu1 %413 }
 0x1e6   : > { %v415_v54 = vsel %vm206_vm5, %v412_v45, %v414_v46  ;;  %v416_v55 = vsel %vm206_vm5, %v414_v46, %v412_v45 }
 0x1e7   : > { %v417_v59 = vmul.f32 %v416_v55, %v209_v41  ;;  %v418_v60 = vmul.f32 %v415_v54, %v210_v43 }
 0x1e9   : > { %v469_v4 = vrot.slane %v417_v59, 4  ;;  %v470_v5 = vrot.slane %v418_v60, 4 }
 0x1ed   : > { %v422_v61 = vpop.permute.xlu0 %421  ;;  %v404_v44 = vpop.permute.xlu1 %403 }
 0x1ee   : > { %v423_v49 = vsel %vm222_vm8, %v420_v36, %v422_v61  ;;  %v424_v62 = vsel %vm222_vm8, %v422_v61, %v420_v36  ;;  %v407_v63 = vsel %vm190_vm7, %v404_v44, %v406_v17  ;;  %v408_v0 = vsel %vm190_vm7, %v406_v17, %v404_v44 }
 0x1ef   : > { %v425_v41 = vmul.f32 %v424_v62, %v225_v19  ;;  %v426_v43 = vmul.f32 %v423_v49, %v226_v20  ;;  %v409_v1 = vmul.f32 %v408_v0, %v193_v14  ;;  %v410_v2 = vmul.f32 %v407_v63, %v194_v18 }
 0x1f1   : > { %v493_v6 = vsel %vm338_vm6, %v425_v41, %v475_v56  ;;  %v494_v29 = vsel %vm338_vm6, %v426_v43, %v476_v58  ;;  %v491_v19 = vsel %vm338_vm6, %v409_v1, %v469_v4  ;;  %v492_v20 = vsel %vm338_vm6, %v410_v2, %v470_v5 }
 0x1f2   : > { %524 = vmatpush.msra.mxu2 %v493_v6  ;;  %544 = vmatpush.msra.mxu3 %v494_v29 }
 0x1f4   : > { %525 = vmatpush.msra.mxu2 %v491_v19  ;;  %545 = vmatpush.msra.mxu3 %v492_v20 }
 0x1f5   : > { %690 = vmatmul.msk.f32.vlgmr.msra.gmra.mxu2 %vm352_vm9, %v499_v3  ;;  %692 = vmatmul.msk.f32.vlgmr.msra.gmra.mxu3 %vm352_vm9, %v499_v3 }
 0x244   : > { %v555_v10 = vpop.permute.xlu0 %554 }
 0x278   : > { %v527_v32 = vpop.f32.mrf.mxu2  ;;  %v547_v14 = vpop.f32.mrf.mxu3 }
 0x279   : > { %v528_v18 = vadd.f32 %v527_v32, %v500_v30  ;;  %v548_v7 = vadd.f32 %v547_v14, %v500_v30 }
 0x27b   : > { %v550_v8 = vmax.f32 %v528_v18, 0.0  ;;  %v551_v9 = vmax.f32 %v548_v7, 0.0 }
 0x27d   : > { %693 = vmatpush.msk.msrb.mxu0 %vm338_vm6, %v550_v8  ;;  %695 = vmatpush.msk.msrb.mxu1 %vm338_vm6, %v551_v9 }
 0x27e   : > { %696 = vmatmul.msk.f32.vlgmr.msrb.gmra.mxu1 %vm557_vm10, %v173_v27  ;;  %694 = vmatmul.msk.f32.vlgmr.msrb.gmra.mxu0 %vm557_vm10, %v173_v27 }
 0x2fb   : > { %v603_v11 = vpop.f32.mrf.mxu1  ;;  %v583_v12 = vpop.f32.mrf.mxu0 }
 0x2fc   : > { %v604_v13 = vadd.f32 %v603_v11, %v555_v10  ;;  %v584_v15 = vadd.f32 %v583_v12, %v555_v10 }
 0x2fe   : > { %v607_v57 = vmul.f32 0.5, %v604_v13  ;;  %v606_v50 = vmul.f32 0.5, %v584_v15 }
 0x300   : > { %722 = vtanh.f32 %v607_v57 }
 0x301   : > { %724 = vtanh.f32 %v606_v50 }
 0x306   : > { %v723_v51 = vpop.eup %722 }
 0x307   : > { %v725_v16 = vpop.eup %724  ;;  %v611_v21 = vadd.f32 1.0, %v723_v51 }
 0x308   : > { %v610_v22 = vadd.f32 1.0, %v725_v16 }
 0x309   : > { %v613_v23 = vmul.f32 0.5, %v611_v21 }
 0x30a   : > { %v612_v25 = vmul.f32 0.5, %v610_v22 }
 0x30b   : > { %v616_v24 = vrot.slane %v613_v23, 6 }
 0x30d   : > { %v618_v26 = vsel %vm617_vm11, %v612_v25, %v616_v24 }
 0x30e   : > { %620 = vst [vmem:[%s170_s16] sm:$0xf] %v618_v26 }
 0x30f PF: > { %s13_s12 = sadd.s32 1, %s732_s12  }
 0x310   : > { %p10_p4 = scmp.ge.s32.totalorder %s13_s12, 4  }
 0x312   :  { %12 = sbr.rel (!%p10_p4) target bundleno = 1 (0x1), region = 62 }

</bundles_post_ra>
